<compile_context>
chip_gen: v5e
topology: v5e:2x2
jax: 0.10.0
libtpu: 0.0.40
codegen_flags: <defaults>
</compile_context>

<pallas_src>
import numpy as np
import jax
import jax.numpy as jnp
from jax.experimental import pallas as pl
from jax.experimental.pallas import tpu as pltpu


# ----------------------------------------------------------------------------
# Group bookkeeping (mirrors networks.loss.create_group_indices semantics).
# ----------------------------------------------------------------------------
def create_group_indices(concept_names):
    group_indices = {}
    idx = 0
    for group, names in concept_names.items():
        group_indices[group] = list(range(idx, idx + len(names)))
        idx += len(names)
    return group_indices


_TB_MAX = 4096                      # packed rows per tile cap (multiple of 32)
_VMEM_LIMIT = 32 * 1024 * 1024      # safe on every chip incl. v7x's 64 MiB


# ----------------------------------------------------------------------------
# Pallas kernel over lane-packed tiles.
#   pred_ref  : (tb, cp)  predictions in (0, 1), native dtype
#   tsel_ref  : (tb, cp)  targets (CE groups pre-argmax'd to one-hot)
#   isbce_ref : (1, cp) f32   1.0 for BCE (singleton) columns, 0.0 for CE cols
#   out_ref   : (1, cp) f32   per-packed-column sums of
#                             t*log(p) + is_bce*(1-t)*log(1-p)  (sign deferred)
# ----------------------------------------------------------------------------
def _make_concept_loss_kernel(tb, cp, n_valid_rows, need_mask):
    def kernel(pred_ref, tsel_ref, isbce_ref, out_ref):
        i = pl.program_id(0)

        @pl.when(i == 0)
        def _init():
            out_ref[...] = jnp.zeros_like(out_ref)

        p = pred_ref[...].astype(jnp.float32)       # (tb, cp)
        t = tsel_ref[...].astype(jnp.float32)       # (tb, cp)
        bce = isbce_ref[...]                        # (1, cp)

        # One shared log serves both the NLL term and BCE's t*log(p) term:
        #   CE columns (bce=0): log(p + 1e-12)  (the -100 clamp never fires)
        #   BCE columns (bce=1): max(log(p), -100) == torch.nn.BCELoss clamp
        lp = jnp.maximum(jnp.log(p + (1.0 - bce) * 1e-12), -100.0)
        l1mp = jnp.maximum(jnp.log(1.0 - p), -100.0)

        # CE columns drop the (1-t)*log(1-p) term via bce == 0; padded zero
        # rows (p == 0, t == 0) contribute exactly zero.
        elem = t * lp + bce * (1.0 - t) * l1mp      # (tb, cp), negated later

        if need_mask:
            # Ragged last tile: rows beyond the array are undefined; zero them.
            rows = i * tb + jax.lax.broadcasted_iota(jnp.int32, (tb, cp), 0)
            elem = jnp.where(rows < n_valid_rows, elem, 0.0)

        out_ref[...] += jnp.sum(elem, axis=0, keepdims=True)

    return kernel


def _packed_column_sums(pred, tsel, is_bce_packed, pack, *,
                        max_rows_per_tile=_TB_MAX,
                        vmem_limit_bytes=_VMEM_LIMIT):
    """Returns per-concept column sums of t*log(p)+is_bce*(1-t)*log(1-p)."""
    B, C = pred.shape
    K = pack
    CP = K * C

    # Row-pad only when B % K != 0 (padded zero rows contribute exactly 0).
    # In the common divisible case the (B, C) -> (B//K, K*C) reshape is a
    # row-major collapse, i.e. a layout-preserving (copy-free) reshape.
    b_pad = pl.cdiv(B, K) * K
    if b_pad != B:
        pad = b_pad - B
        pred = jnp.pad(pred, ((0, pad), (0, 0)))
        tsel = jnp.pad(tsel, ((0, pad), (0, 0)))
    bp = b_pad // K
    pred_p = pred.reshape(bp, CP)
    tsel_p = tsel.reshape(bp, CP)

    # Tile sizing: sublane-aligned cap; single full-extent tile when it fits.
    cap = max(8, (min(int(max_rows_per_tile), _TB_MAX) // 8) * 8)
    if bp <= cap:
        tb, num_tiles, need_mask = bp, 1, False
    else:
        tb = cap
        num_tiles = pl.cdiv(bp, tb)
        need_mask = (bp % tb) != 0

    kernel = _make_concept_loss_kernel(tb, CP, bp, need_mask)

    col_sums_packed = pl.pallas_call(
        kernel,
        out_shape=jax.ShapeDtypeStruct((1, CP), jnp.float32),
        grid_spec=pltpu.PrefetchScalarGridSpec(
            num_scalar_prefetch=0,
            grid=(num_tiles,),
            in_specs=[
                pl.BlockSpec((tb, CP), lambda i: (i, 0)),
                pl.BlockSpec((tb, CP), lambda i: (i, 0)),
                pl.BlockSpec((1, CP), lambda i: (0, 0)),
            ],
            out_specs=pl.BlockSpec((1, CP), lambda i: (0, 0)),
        ),
        compiler_params=pltpu.CompilerParams(
            dimension_semantics=("arbitrary",),
            vmem_limit_bytes=vmem_limit_bytes,
        ),
    )(pred_p, tsel_p, is_bce_packed)

    # Fold the K packed row-copies back to per-concept sums.
    return col_sums_packed.reshape(K, C).sum(axis=0)          # (C,)


class CustomConceptLossPallas:
    def __init__(self, concept_names, *, assume_one_hot_targets=False,
                 cast_inputs_to_bf16=False, max_rows_per_tile=_TB_MAX):
        self.concept_names = concept_names
        self.group_indices = create_group_indices(concept_names)
        self.assume_one_hot_targets = assume_one_hot_targets
        # bf16 inputs halve HBM traffic (targets are usually exactly
        # representable); off by default to keep exact f32 parity.
        self.cast_inputs_to_bf16 = cast_inputs_to_bf16
        self.max_rows_per_tile = max_rows_per_tile

        num_concepts = sum(len(v) for v in self.group_indices.values())
        num_groups = len(self.group_indices)

        membership = np.zeros((num_concepts, num_groups), dtype=np.float32)
        is_bce = np.zeros((1, num_concepts), dtype=np.float32)
        is_ce_col = np.zeros((num_concepts,), dtype=bool)
        gid = np.zeros((num_concepts,), dtype=np.int32)
        gstart = np.zeros((num_concepts,), dtype=np.int32)

        self._group_order = []
        for g, (group, indices) in enumerate(self.group_indices.items()):
            assert len(indices) != 2, \
                "Group of two concepts should be handled as one concept."
            self._group_order.append(group)
            for c in indices:
                membership[c, g] = 1.0
                gid[c] = g
                gstart[c] = indices[0]
            if len(indices) == 1:
                is_bce[0, indices[0]] = 1.0
            else:
                is_ce_col[indices] = True

        self.num_concepts = num_concepts
        self.num_groups = num_groups
        # Lane packing factor: K original rows per packed row so K*C <= 128.
        self.pack = max(1, 128 // num_concepts)
        self._has_ce = bool(is_ce_col.any())
        self.membership = jnp.asarray(membership)                 # (C, G)
        self.is_bce_packed = jnp.asarray(np.tile(is_bce, (1, self.pack)))
        self._is_ce_col = jnp.asarray(is_ce_col)
        self._gid = jnp.asarray(gid)
        self._gstart = jnp.asarray(gstart)

        self._forward_jit = jax.jit(self._forward)

    def _select_targets(self, targets):
        """Vectorized CE target selection: one-hot of the per-group argmax
        (first-max tie-break, matching torch.argmax).  No per-group scatters."""
        t = targets.astype(jnp.float32)
        B = t.shape[0]
        seg_max = jax.ops.segment_max(t.T, self._gid,
                                      num_segments=self.num_groups,
                                      indices_are_sorted=True)      # (G, B)
        gmax_col = seg_max[self._gid, :].T                          # (B, C)
        is_max = (t == gmax_col)
        cum = jnp.cumsum(is_max.astype(jnp.int32), axis=1)          # inclusive
        cum_pad = jnp.concatenate(
            [jnp.zeros((B, 1), jnp.int32), cum], axis=1)
        prev = cum_pad[:, self._gstart]                             # (B, C)
        first_max = is_max & ((cum - prev) == 1)
        ce_sel = first_max.astype(targets.dtype)
        return jnp.where(self._is_ce_col, ce_sel, targets)

    def _forward(self, predictions, targets):
        B = predictions.shape[0]
        if self._has_ce and not self.assume_one_hot_targets:
            tsel = self._select_targets(targets)
        else:
            tsel = targets
        if self.cast_inputs_to_bf16:
            predictions = predictions.astype(jnp.bfloat16)
            tsel = tsel.astype(jnp.bfloat16)
        col_sums = _packed_column_sums(
            predictions, tsel, self.is_bce_packed, self.pack,
            max_rows_per_tile=self.max_rows_per_tile)
        group_losses = -(col_sums @ self.membership) / B            # (G,)
        total_loss = jnp.sum(group_losses)
        return total_loss, group_losses

    def __call__(self, predictions, targets):
        total_loss, group_losses = self._forward_jit(predictions, targets)
        # TODO(synk): original module returns a Python list of per-group numpy
        # scalars (forces G host syncs); we return the (G,) device array (in
        # self._group_order order) instead.
        return total_loss, group_losses


# ----------------------------------------------------------------------------
# Pure-JAX reference (mirrors the PyTorch forward) for correctness checks.
# ----------------------------------------------------------------------------
def reference_loss(group_indices, predictions, targets):
    total = 0.0
    individual = []
    for group, indices in group_indices.items():
        if len(indices) > 2:
            cols = jnp.asarray(indices)
            gp = predictions[:, cols]
            gl = jnp.log(gp + 1e-12)
            gt = jnp.argmax(targets[:, cols], axis=1)
            loss = -jnp.mean(jnp.take_along_axis(gl, gt[:, None], axis=1))
        else:
            c = indices[0]
            p = predictions[:, c]
            t = targets[:, c]
            lp = jnp.maximum(jnp.log(p), -100.0)
            l1p = jnp.maximum(jnp.log(1.0 - p), -100.0)
            loss = jnp.mean(-(t * lp + (1.0 - t) * l1p))
        total = total + loss
        individual.append(loss)
    return total, individual


if __name__ == "__main__":
    # Deterministic synthetic concept groups: two multi-class + two binary.
    concept_names = {
        "color": ["red", "green", "blue", "yellow"],   # 4-way CE group
        "shape": ["circle", "square", "triangle"],     # 3-way CE group
        "is_big": ["is_big"],                          # BCE concept
        "is_shiny": ["is_shiny"],                      # BCE concept
    }

    def make_inputs(key, B, group_indices, one_hot_ce=True):
        C = sum(len(v) for v in group_indices.values())
        k_pred, k_t = jax.random.split(key)
        predictions = jax.nn.sigmoid(
            jax.random.normal(k_pred, (B, C), jnp.float32))
        if one_hot_ce:
            targets = jnp.zeros((B, C), jnp.float32)
            ks = jax.random.split(k_t, len(group_indices))
            for kk, (_grp, idx) in zip(ks, group_indices.items()):
                if len(idx) > 2:
                    lbl = jax.random.randint(kk, (B,), 0, len(idx))
                    targets = targets.at[:, jnp.asarray(idx)].set(
                        jax.nn.one_hot(lbl, len(idx), dtype=jnp.float32))
                else:
                    targets = targets.at[:, idx[0]].set(
                        jax.random.bernoulli(kk, 0.5, (B,)).astype(jnp.float32))
        else:
            # Soft / non-one-hot targets: exercises the argmax selection pass
            # for CE groups and soft BCE targets.
            targets = jax.random.uniform(k_t, (B, C), jnp.float32)
        return predictions, targets

    key = jax.random.PRNGKey(0)
    k1, k2 = jax.random.split(key)

    # --- Test 1: small batch (B < pack factor -> single packed row/tile). ---
    loss_mod = CustomConceptLossPallas(concept_names)
    preds1, tgts1 = make_inputs(k1, 8, loss_mod.group_indices, one_hot_ce=True)
    total1, groups1 = loss_mod(preds1, tgts1)
    total1 = jax.block_until_ready(total1)
    ref_t1, ref_g1 = reference_loss(loss_mod.group_indices, preds1, tgts1)
    np.testing.assert_allclose(np.asarray(total1), np.asarray(ref_t1),
                               rtol=1e-5, atol=1e-5)
    np.testing.assert_allclose(np.asarray(groups1),
                               np.asarray(jnp.stack(ref_g1)),
                               rtol=1e-5, atol=1e-5)

    # --- Test 2: B not divisible by the pack factor + small tile override so
    # the multi-tile / ragged-last-tile mask path runs; soft targets exercise
    # the vectorized argmax selection. ---
    loss_mod2 = CustomConceptLossPallas(concept_names, max_rows_per_tile=16)
    preds2, tgts2 = make_inputs(k2, 300, loss_mod2.group_indices,
                                one_hot_ce=False)
    total2, groups2 = loss_mod2(preds2, tgts2)
    total2 = jax.block_until_ready(total2)
    ref_t2, ref_g2 = reference_loss(loss_mod2.group_indices, preds2, tgts2)
    np.testing.assert_allclose(np.asarray(total2), np.asarray(ref_t2),
                               rtol=5e-5, atol=5e-5)
    np.testing.assert_allclose(np.asarray(groups2),
                               np.asarray(jnp.stack(ref_g2)),
                               rtol=5e-5, atol=5e-5)

    print("KERNEL_OK")
</pallas_src>

<mosaic_0001>
module attributes {stable_mosaic.version = 11 : i64} {
  func.func @kernel(%arg0: i32, %arg1: memref<1x126xf32, #tpu.memory_space<vmem>>, %arg2: memref<1x126xf32, #tpu.memory_space<vmem>>, %arg3: memref<1x126xf32, #tpu.memory_space<vmem>>, %arg4: memref<1x126xf32, #tpu.memory_space<vmem>>) attributes {dimension_semantics = [#tpu.dimension_semantics<arbitrary>], iteration_bounds = array<i64: 1>, scalar_prefetch = 0 : i64, scratch_operands = 0 : i64, tpu.core_type = #tpu.core_type<tc>, window_params = [{transform_indices = @transform_0, window_bounds = array<i64: 1, 126>}, {transform_indices = @transform_1, window_bounds = array<i64: 1, 126>}, {pipeline_mode = #tpu.pipeline_mode<synchronous>, transform_indices = @transform_2, window_bounds = array<i64: 1, 126>}, {pipeline_mode = #tpu.pipeline_mode<synchronous>, transform_indices = @transform_3, window_bounds = array<i64: 1, 126>}]} {
    %c0_i32 = arith.constant 0 : i32
    %0 = arith.cmpi eq, %arg0, %c0_i32 : i32
    %1 = arith.extui %0 : i1 to i32
    %c0_i32_0 = arith.constant 0 : i32
    %2 = arith.cmpi ne, %1, %c0_i32_0 : i32
    scf.if %2 {
      %cst_16 = arith.constant 0.000000e+00 : f32
      %30 = vector.broadcast %cst_16 : f32 to vector<1x126xf32>
      %c0_17 = arith.constant 0 : index
      %c0_18 = arith.constant 0 : index
      %31 = vector.load %arg4[%c0_17, %c0_18] : memref<1x126xf32, #tpu.memory_space<vmem>>, vector<1x126xf32>
      tpu.vector_store %arg4[%c0_17, %c0_18], %30 {strides = array<i32>} : memref<1x126xf32, #tpu.memory_space<vmem>>, vector<1x126xf32>,
    } else {
    }
    %c0 = arith.constant 0 : index
    %c0_1 = arith.constant 0 : index
    %3 = vector.load %arg1[%c0, %c0_1] : memref<1x126xf32, #tpu.memory_space<vmem>>, vector<1x126xf32>
    %c0_2 = arith.constant 0 : index
    %c0_3 = arith.constant 0 : index
    %4 = vector.load %arg2[%c0_2, %c0_3] : memref<1x126xf32, #tpu.memory_space<vmem>>, vector<1x126xf32>
    %c0_4 = arith.constant 0 : index
    %c0_5 = arith.constant 0 : index
    %5 = vector.load %arg3[%c0_4, %c0_5] : memref<1x126xf32, #tpu.memory_space<vmem>>, vector<1x126xf32>
    %cst = arith.constant 1.000000e+00 : f32
    %6 = vector.broadcast %cst : f32 to vector<1x126xf32>
    %7 = arith.subf %6, %5 : vector<1x126xf32>
    %cst_6 = arith.constant 9.99999996E-13 : f32
    %8 = vector.broadcast %cst_6 : f32 to vector<1x126xf32>
    %9 = arith.mulf %7, %8 : vector<1x126xf32>
    %10 = arith.addf %3, %9 : vector<1x126xf32>
    %11 = math.log %10 : vector<1x126xf32>
    %cst_7 = arith.constant -1.000000e+02 : f32
    %12 = vector.broadcast %cst_7 : f32 to vector<1x126xf32>
    %13 = arith.maximumf %11, %12 : vector<1x126xf32>
    %cst_8 = arith.constant 1.000000e+00 : f32
    %14 = vector.broadcast %cst_8 : f32 to vector<1x126xf32>
    %15 = arith.subf %14, %3 : vector<1x126xf32>
    %16 = math.log %15 : vector<1x126xf32>
    %cst_9 = arith.constant -1.000000e+02 : f32
    %17 = vector.broadcast %cst_9 : f32 to vector<1x126xf32>
    %18 = arith.maximumf %16, %17 : vector<1x126xf32>
    %19 = arith.mulf %4, %13 : vector<1x126xf32>
    %cst_10 = arith.constant 1.000000e+00 : f32
    %20 = vector.broadcast %cst_10 : f32 to vector<1x126xf32>
    %21 = arith.subf %20, %4 : vector<1x126xf32>
    %22 = arith.mulf %5, %21 : vector<1x126xf32>
    %23 = arith.mulf %22, %18 : vector<1x126xf32>
    %24 = arith.addf %19, %23 : vector<1x126xf32>
    %c0_11 = arith.constant 0 : index
    %c0_12 = arith.constant 0 : index
    %25 = vector.load %arg4[%c0_11, %c0_12] : memref<1x126xf32, #tpu.memory_space<vmem>>, vector<1x126xf32>
    %cst_13 = arith.constant dense<0.000000e+00> : vector<126xf32>
    %26 = vector.multi_reduction <add>, %24, %cst_13 [0] : vector<1x126xf32> to vector<126xf32>
    %27 = vector.shape_cast %26 : vector<126xf32> to vector<1x126xf32>
    %28 = arith.addf %25, %27 : vector<1x126xf32>
    %c0_14 = arith.constant 0 : index
    %c0_15 = arith.constant 0 : index
    %29 = vector.load %arg4[%c0_14, %c0_15] : memref<1x126xf32, #tpu.memory_space<vmem>>, vector<1x126xf32>
    tpu.vector_store %arg4[%c0_14, %c0_15], %28 {strides = array<i32>} : memref<1x126xf32, #tpu.memory_space<vmem>>, vector<1x126xf32>,
    return
  }
  func.func @transform_0(%arg0: i32) -> (i32, i32) {
    %c0_i32 = arith.constant 0 : i32
    %c0_i32_0 = arith.constant 0 : i32
    return %arg0, %c0_i32 : i32, i32
  }
  func.func @transform_1(%arg0: i32) -> (i32, i32) {
    %c0_i32 = arith.constant 0 : i32
    %c0_i32_0 = arith.constant 0 : i32
    return %arg0, %c0_i32 : i32, i32
  }
  func.func @transform_2(%arg0: i32) -> (i32, i32) {
    %c0_i32 = arith.constant 0 : i32
    %c0_i32_0 = arith.constant 0 : i32
    %c0_i32_1 = arith.constant 0 : i32
    return %c0_i32, %c0_i32_0 : i32, i32
  }
  func.func @transform_3(%arg0: i32) -> (i32, i32) {
    %c0_i32 = arith.constant 0 : i32
    %c0_i32_0 = arith.constant 0 : i32
    %c0_i32_1 = arith.constant 0 : i32
    return %c0_i32, %c0_i32_0 : i32, i32
  }
}

</mosaic_0001>

<bundles_post_ra>
// kernel: _forward.1
= control target key start
LH: loop header
LB: loop body
LE: loop exit
PB: predicated region body
PF: predicated region fallthrough
CT: control target
= control target key end

     0   :  { %vm18_vm0 = vcmask 1024000   ;;  %v52_v0 = vmov 0.0   ;;  %s93_s0 = inlined_call_operand.vmem [shape: f32[1,126], index: 0, kind: input, shape index: {}]   ;;  %s94_s2 = inlined_call_operand.vmem [shape: f32[1,126], index: 2, kind: input, shape index: {}]   ;;  %s95_s3 = inlined_call_operand.vmem [shape: f32[1,126], index: 3, kind: output, shape index: {}]   ;;  %s96_s1 = inlined_call_operand.vmem [shape: f32[1,126], index: 1, kind: input, shape index: {}]  }
   0x1   :  { %19 = vst.msk [vmem:[%s95_s3] sm:$0x1] %vm18_vm0, %v52_v0  ;;  %v20_v1 = vld [vmem:[%s93_s0] sm:$0x1] }
   0x2   :  { %v22_v2 = vld [vmem:[%s94_s2] sm:$0x1]  ;;  %v29_v3 = vsub.f32 1.0, %v20_v1 }
   0x3   :  { %v23_v4 = vsub.f32 1.0, %v22_v2  ;;  %v21_v6 = vld [vmem:[%s96_s1] sm:$0x1] }
   0x4   :  { %48 = vlog2.f32 %v29_v3  ;;  %v34_v9 = vsub.f32 1.0, %v21_v6 }
   0x5   :  { %v24_v5 = vmul.f32 1e-12, %v23_v4 }
   0x6   :  { %v35_v12 = vmul.f32 %v34_v9, %v22_v2 }
   0x7   :  { %v25_v7 = vadd.f32 %v24_v5, %v20_v1 }
   0x8   :  { %v38_v18 = vld [vmem:[%s95_s3] sm:$0x1] }
   0x9   :  { %50 = vlog2.f32 %v25_v7 }
   0xa   :  { %v49_v8 = vpop.eup %48 }
   0xb   :  { %v31_v10 = vmul.f32 0.6931472, %v49_v8 }
   0xd   :  { %v32_v11 = vmax.f32 %v31_v10, -100.0 }
   0xf   :  { %v51_v13 = vpop.eup %50  ;;  %v36_v16 = vmul.f32 %v35_v12, %v32_v11 }
  0x10   :  { %v27_v14 = vmul.f32 0.6931472, %v51_v13 }
  0x12   :  { %v28_v15 = vmax.f32 %v27_v14, -100.0 }
  0x14   :  { %v33_v17 = vmul.f32 %v28_v15, %v21_v6 }
  0x16   :  { %v37_v19 = vadd.f32 %v36_v16, %v33_v17 }
  0x18   :  { %v40_v20 = vadd.f32 %v38_v18, %v37_v19 }
  0x1a   :  { %42 = vst.msk [vmem:[%s95_s3] sm:$0x1] %vm18_vm0, %v40_v20 }

</bundles_post_ra>
